<compile_context>
chip_gen: v6e
topology: v6e:2x2x1
jax: 0.10.0
libtpu: 0.0.40
codegen_flags: <defaults>
</compile_context>

<pallas_src>
import functools

import jax
import jax.numpy as jnp
from jax.experimental import pallas as pl
from jax.experimental.pallas import tpu as pltpu

_LN_EPS = 1e-5  # torch.nn.LayerNorm default


def _round_up(v, m):
    return (v + m - 1) // m * m


def _pick_tile(dim, candidates):
    for c in candidates:
        if dim >= c and dim % c == 0:
            return c
    return dim


# ------------------------------------------------------------------ linear --
def _linear_kernel(x_ref, w_ref, b_ref, o_ref, acc_ref):
    """out = x @ w + b with a resident f32 accumulator over the K grid axis."""
    k = pl.program_id(2)

    @pl.when(k == 0)
    def _():
        acc_ref[...] = jnp.zeros_like(acc_ref)

    acc_ref[...] += jnp.dot(x_ref[...], w_ref[...],
                            preferred_element_type=jnp.float32)

    @pl.when(k == pl.num_programs(2) - 1)
    def _():
        y = acc_ref[...] + b_ref[...].astype(jnp.float32)
        o_ref[...] = y.astype(o_ref.dtype)


def _linear(x2d, w, b, *, tile_m=256, tile_n=512, tile_k=256):
    """x2d: (R, Din); w: (Din, Dout) pre-transposed; b: (1, Dout)."""
    r, d_in = x2d.shape
    d_out = w.shape[1]

    r_pad = _round_up(r, 8)                    # minimal sublane padding only
    if r_pad != r:
        x2d = jnp.pad(x2d, ((0, r_pad - r), (0, 0)))
    tm = min(tile_m, r_pad)
    tn = _pick_tile(d_out, (tile_n, 256, 128))
    tk = _pick_tile(d_in, (tile_k, 128))
    grid = (pl.cdiv(r_pad, tm), d_out // tn, d_in // tk)

    flops = 2 * r_pad * d_in * d_out
    bytes_accessed = int((x2d.size + w.size + b.size + r_pad * d_out)
                         * x2d.dtype.itemsize)

    out = pl.pallas_call(
        _linear_kernel,
        out_shape=jax.ShapeDtypeStruct((r_pad, d_out), x2d.dtype),
        grid_spec=pltpu.PrefetchScalarGridSpec(
            num_scalar_prefetch=0,
            grid=grid,
            in_specs=[
                pl.BlockSpec((tm, tk), lambda i, j, k: (i, k)),   # x rows
                pl.BlockSpec((tk, tn), lambda i, j, k: (k, j)),   # W tile
                pl.BlockSpec((1, tn), lambda i, j, k: (0, j)),    # bias
            ],
            out_specs=pl.BlockSpec((tm, tn), lambda i, j, k: (i, j)),
            scratch_shapes=[pltpu.VMEM((tm, tn), jnp.float32)],
        ),
        compiler_params=pltpu.CompilerParams(
            dimension_semantics=("parallel", "parallel", "arbitrary")),
        cost_estimate=pl.CostEstimate(flops=flops, transcendentals=0,
                                      bytes_accessed=bytes_accessed),
    )(x2d, w, b)
    return out[:r]


# --------------------------------------------------------------- attention --
def _ln_3d(t, g_ref, b_ref):
    """LayerNorm over the last axis of a (rows, H, Dh) f32 tensor."""
    mu = jnp.mean(t, axis=-1, keepdims=True)
    var = jnp.mean(jnp.square(t - mu), axis=-1, keepdims=True)
    t = (t - mu) * jax.lax.rsqrt(var + _LN_EPS)
    return t * g_ref[...].astype(jnp.float32) + b_ref[...].astype(jnp.float32)


def _attn_kernel(q_ref, kv_ref, qg_ref, qb_ref, kg_ref, kb_ref, o_ref, kn_ref,
                 *, num_heads, head_dim, scale, allow_zero_attn):
    c = num_heads * head_dim
    kv = kv_ref[0]                                            # (M, 2C) lane-dense

    # K LayerNorm depends only on the batch index -> compute once per batch
    # (first query tile) and cache it in VMEM scratch for the remaining tiles.
    @pl.when(pl.program_id(1) == 0)
    def _():
        k = kv[:, :c].astype(jnp.float32).reshape(-1, num_heads, head_dim)
        kn_ref[...] = _ln_3d(k, kg_ref, kb_ref).astype(kn_ref.dtype)

    q = q_ref[0].astype(jnp.float32).reshape(-1, num_heads, head_dim)  # (tq,H,Dh)
    qn = _ln_3d(q, qg_ref, qb_ref).astype(q_ref.dtype)   # feed MXU in input dtype
    kn = kn_ref[...]                                       # (M, H, Dh)
    v = kv[:, c:].reshape(-1, num_heads, head_dim)         # (M, H, Dh)

    # Per-head scaled dot-product attention, batched over the head axis.
    s = jnp.einsum("qhd,khd->hqk", qn, kn,
                   preferred_element_type=jnp.float32) * scale        # (H,tq,M)
    s_max = jnp.max(s, axis=-1, keepdims=True)
    if allow_zero_attn:                  # softmax1: implicit extra zero logit
        s_max = jnp.maximum(s_max, 0.0)
    e = jnp.exp(s - s_max)
    denom = jnp.sum(e, axis=-1, keepdims=True)
    if allow_zero_attn:
        denom = denom + jnp.exp(-s_max)
    inv = pl.reciprocal(denom, approx=True)        # EUP, frees the VALU divide
    inv = inv * (2.0 - denom * inv)                # one Newton step -> ~f32 exact
    p = (e * inv).astype(v.dtype)

    out = jnp.einsum("hqk,khd->qhd", p, v,
                     preferred_element_type=jnp.float32)               # (tq,H,Dh)
    o_ref[0] = out.reshape(-1, c).astype(o_ref.dtype)   # lane-dense (tq, C) store


def _attention(qb, kvb, q_gamma, q_beta, k_gamma, k_beta, *,
               num_heads, head_dim, scale, allow_zero_attn, tile_q=128):
    """qb: (B, N, C); kvb: (B, M, 2C) with k in [:C] and v in [C:]."""
    b, n, c = qb.shape
    m = kvb.shape[1]

    if n <= tile_q:
        tq, n_pad = n, n                       # full-extent block, no padding
    else:
        n_pad = _round_up(n, 8)                # minimal padding; grid uses cdiv
        if n_pad != n:
            qb = jnp.pad(qb, ((0, 0), (0, n_pad - n), (0, 0)))
        tq = tile_q
    grid = (b, pl.cdiv(n_pad, tq))

    flops = 4 * b * n_pad * m * c
    transcendentals = b * num_heads * n_pad * m
    bytes_accessed = int((qb.size + kvb.size + b * n_pad * c) * qb.dtype.itemsize)

    kernel = functools.partial(_attn_kernel, num_heads=num_heads,
                               head_dim=head_dim, scale=scale,
                               allow_zero_attn=allow_zero_attn)
    out = pl.pallas_call(
        kernel,
        out_shape=jax.ShapeDtypeStruct((b, n_pad, c), qb.dtype),
        grid_spec=pltpu.PrefetchScalarGridSpec(
            num_scalar_prefetch=0,
            grid=grid,
            in_specs=[
                pl.BlockSpec((1, tq, c), lambda bi, qi: (bi, qi, 0)),    # q tile
                pl.BlockSpec((1, m, 2 * c), lambda bi, qi: (bi, 0, 0)),  # [k|v]
                pl.BlockSpec((1, head_dim), lambda bi, qi: (0, 0)),      # q_norm g
                pl.BlockSpec((1, head_dim), lambda bi, qi: (0, 0)),      # q_norm b
                pl.BlockSpec((1, head_dim), lambda bi, qi: (0, 0)),      # k_norm g
                pl.BlockSpec((1, head_dim), lambda bi, qi: (0, 0)),      # k_norm b
            ],
            out_specs=pl.BlockSpec((1, tq, c), lambda bi, qi: (bi, qi, 0)),
            scratch_shapes=[pltpu.VMEM((m, num_heads, head_dim), qb.dtype)],
        ),
        compiler_params=pltpu.CompilerParams(
            # batch axis parallel (v7x megacore splits work when B >= 2);
            # query-tile axis arbitrary so the cached K-LayerNorm stays valid.
            dimension_semantics=("parallel", "arbitrary")),
        cost_estimate=pl.CostEstimate(flops=flops,
                                      transcendentals=transcendentals,
                                      bytes_accessed=bytes_accessed),
    )(qb, kvb, q_gamma, q_beta, k_gamma, k_beta)
    return out[:, :n]


# ------------------------------------------------------------------ module --
def norm_cross_attention(x, context, params, *, num_heads,
                         allow_zero_attn=False, mask=None):
    """x: (B, N, C); context: (B, M, C)."""
    if mask is not None:
        # TODO(synk): boolean attention mask (masked_fill with -finfo.max) not wired up.
        raise NotImplementedError("mask is not supported in this kernel")
    b, n, c = x.shape
    m = context.shape[1]
    dh = c // num_heads

    q2d = _linear(x.reshape(b * n, c), params["wq"], params["bq"])
    kv2d = _linear(context.reshape(b * m, c), params["wkv"], params["bkv"])

    # Head-fused layouts: a q row is (H, Dh) head-major; a kv row is (2, H, Dh)
    # so k occupies columns [0, C) and v columns [C, 2C).  Only free metadata
    # reshapes here -- no HBM transposes around the attention kernel.
    qb = q2d.reshape(b, n, c)
    kvb = kv2d.reshape(b, m, 2 * c)

    ob = _attention(qb, kvb,
                    params["q_gamma"], params["q_beta"],
                    params["k_gamma"], params["k_beta"],
                    num_heads=num_heads, head_dim=dh, scale=dh ** (-0.5),
                    allow_zero_attn=allow_zero_attn)

    out = _linear(ob.reshape(b * n, c), params["wproj"], params["bproj"])
    # attn_drop / proj_drop: inference no-ops (p = 0.0).
    return out.reshape(b, n, c)


def init_params(key, dim, num_heads, *, qkv_bias=False, proj_bias=True,
                dtype=jnp.float32):
    """Deterministic synthetic parameters matching NormCrossAttention shapes."""
    head_dim = dim // num_heads
    ks = jax.random.split(key, 10)
    s = 1.0 / float(jnp.sqrt(dim))

    # nn.Linear stores weight as (out, in); pre-transposed here to (in, out).
    wq = jax.random.uniform(ks[0], (dim, dim), dtype, -s, s)
    bq = (jax.random.uniform(ks[1], (1, dim), dtype, -s, s) if qkv_bias
          else jnp.zeros((1, dim), dtype))
    wkv = jax.random.uniform(ks[2], (dim, 2 * dim), dtype, -s, s)
    bkv = (jax.random.uniform(ks[3], (1, 2 * dim), dtype, -s, s) if qkv_bias
           else jnp.zeros((1, 2 * dim), dtype))
    wproj = jax.random.uniform(ks[4], (dim, dim), dtype, -s, s)
    bproj = (jax.random.uniform(ks[5], (1, dim), dtype, -s, s) if proj_bias
             else jnp.zeros((1, dim), dtype))

    # LayerNorm affine params, perturbed from the ones/zeros default so the
    # affine path is actually exercised in the test.
    q_gamma = 1.0 + 0.1 * jax.random.normal(ks[6], (1, head_dim), dtype)
    q_beta = 0.1 * jax.random.normal(ks[7], (1, head_dim), dtype)
    k_gamma = 1.0 + 0.1 * jax.random.normal(ks[8], (1, head_dim), dtype)
    k_beta = 0.1 * jax.random.normal(ks[9], (1, head_dim), dtype)

    return dict(wq=wq, bq=bq, wkv=wkv, bkv=bkv, wproj=wproj, bproj=bproj,
                q_gamma=q_gamma, q_beta=q_beta, k_gamma=k_gamma, k_beta=k_beta)


def _reference(x, context, p, *, num_heads, allow_zero_attn=False):
    """Pure-JAX reference of the PyTorch forward for a sanity check."""
    b, n, c = x.shape
    m = context.shape[1]
    h = num_heads
    dh = c // h

    q = x.reshape(b * n, c) @ p["wq"] + p["bq"][0]
    kv = context.reshape(b * m, c) @ p["wkv"] + p["bkv"][0]
    q = q.reshape(b, n, h, dh).transpose(0, 2, 1, 3)
    kv = kv.reshape(b, m, 2, h, dh).transpose(2, 0, 3, 1, 4)
    k, v = kv[0], kv[1]

    def ln(t, g, bb):
        mu = t.mean(-1, keepdims=True)
        var = ((t - mu) ** 2).mean(-1, keepdims=True)
        return (t - mu) / jnp.sqrt(var + _LN_EPS) * g + bb

    q = ln(q, p["q_gamma"][0], p["q_beta"][0])
    k = ln(k, p["k_gamma"][0], p["k_beta"][0])

    attn = jnp.einsum("bhnd,bhmd->bhnm", q, k) * (dh ** -0.5)
    if allow_zero_attn:
        attn = jnp.pad(attn, ((0, 0), (0, 0), (0, 0), (0, 1)))
        attn = jax.nn.softmax(attn, axis=-1)[..., :-1]
    else:
        attn = jax.nn.softmax(attn, axis=-1)

    out = jnp.einsum("bhnm,bhmd->bhnd", attn, v)
    out = out.transpose(0, 2, 1, 3).reshape(b * n, c)
    out = out @ p["wproj"] + p["bproj"][0]
    return out.reshape(b, n, c)


if __name__ == "__main__":
    key = jax.random.PRNGKey(0)
    kx, kc, kp = jax.random.split(key, 3)

    batch, n_q, n_ctx, dim, num_heads = 2, 8, 16, 128, 8  # head_dim = 16

    x = jax.random.normal(kx, (batch, n_q, dim), jnp.float32)
    context = jax.random.normal(kc, (batch, n_ctx, dim), jnp.float32)
    params = init_params(kp, dim, num_heads)

    for zero_attn in (False, True):
        out = norm_cross_attention(x, context, params, num_heads=num_heads,
                                   allow_zero_attn=zero_attn)
        out = jax.block_until_ready(out)
        ref = _reference(x, context, params, num_heads=num_heads,
                         allow_zero_attn=zero_attn)
        assert out.shape == (batch, n_q, dim)
        assert jnp.allclose(out, ref, atol=1e-4, rtol=1e-4), (
            f"mismatch vs reference (allow_zero_attn={zero_attn})")

    print("KERNEL_OK")
</pallas_src>

<mosaic_0001>
module attributes {stable_mosaic.version = 11 : i64} {
  func.func @_linear_kernel(%arg0: i32, %arg1: i32, %arg2: i32, %arg3: memref<16x128xf32, #tpu.memory_space<vmem>>, %arg4: memref<128x128xf32, #tpu.memory_space<vmem>>, %arg5: memref<1x128xf32, #tpu.memory_space<vmem>>, %arg6: memref<16x128xf32, #tpu.memory_space<vmem>>, %arg7: memref<16x128xf32, #tpu.memory_space<vmem>>) attributes {dimension_semantics = [#tpu.dimension_semantics<parallel>, #tpu.dimension_semantics<parallel>, #tpu.dimension_semantics<arbitrary>], iteration_bounds = array<i64: 1, 1, 1>, scalar_prefetch = 0 : i64, scratch_operands = 1 : i64, tpu.core_type = #tpu.core_type<tc>, window_params = [{transform_indices = @transform_0, window_bounds = array<i64: 16, 128>}, {transform_indices = @transform_1, window_bounds = array<i64: 128, 128>}, {transform_indices = @transform_2, window_bounds = array<i64: 1, 128>}, {transform_indices = @transform_3, window_bounds = array<i64: 16, 128>}]} {
    %c0_i32 = arith.constant 0 : i32
    %0 = arith.cmpi eq, %arg2, %c0_i32 : i32
    %1 = arith.extui %0 : i1 to i32
    %c0_i32_0 = arith.constant 0 : i32
    %2 = arith.cmpi ne, %1, %c0_i32_0 : i32
    scf.if %2 {
      %cst_10 = arith.constant 0.000000e+00 : f32
      %12 = vector.broadcast %cst_10 : f32 to vector<16x128xf32>
      %c0_11 = arith.constant 0 : index
      %c0_12 = arith.constant 0 : index
      %13 = vector.load %arg7[%c0_11, %c0_12] : memref<16x128xf32, #tpu.memory_space<vmem>>, vector<16x128xf32>
      tpu.vector_store %arg7[%c0_11, %c0_12], %12 {strides = array<i32>} : memref<16x128xf32, #tpu.memory_space<vmem>>, vector<16x128xf32>,
    } else {
    }
    %c0 = arith.constant 0 : index
    %c0_1 = arith.constant 0 : index
    %3 = vector.load %arg7[%c0, %c0_1] : memref<16x128xf32, #tpu.memory_space<vmem>>, vector<16x128xf32>
    %c0_2 = arith.constant 0 : index
    %c0_3 = arith.constant 0 : index
    %4 = vector.load %arg3[%c0_2, %c0_3] : memref<16x128xf32, #tpu.memory_space<vmem>>, vector<16x128xf32>
    %c0_4 = arith.constant 0 : index
    %c0_5 = arith.constant 0 : index
    %5 = vector.load %arg4[%c0_4, %c0_5] : memref<128x128xf32, #tpu.memory_space<vmem>>, vector<128x128xf32>
    %cst = arith.constant dense<0.000000e+00> : vector<16x128xf32>
    %6 = tpu.matmul %4, %5, %cst {dimension_numbers = #tpu.dot_dimension_numbers<[1], [0], [0], [1], [0, 0, 1, 1], [], []>} : vector<16x128xf32>, vector<128x128xf32>, vector<16x128xf32> -> vector<16x128xf32>
    %7 = arith.addf %3, %6 : vector<16x128xf32>
    %c0_6 = arith.constant 0 : index
    %c0_7 = arith.constant 0 : index
    %8 = vector.load %arg7[%c0_6, %c0_7] : memref<16x128xf32, #tpu.memory_space<vmem>>, vector<16x128xf32>
    tpu.vector_store %arg7[%c0_6, %c0_7], %7 {strides = array<i32>} : memref<16x128xf32, #tpu.memory_space<vmem>>, vector<16x128xf32>,
    %c0_i32_8 = arith.constant 0 : i32
    %9 = arith.cmpi eq, %arg2, %c0_i32_8 : i32
    %10 = arith.extui %9 : i1 to i32
    %c0_i32_9 = arith.constant 0 : i32
    %11 = arith.cmpi ne, %10, %c0_i32_9 : i32
    scf.if %11 {
      %c0_10 = arith.constant 0 : index
      %c0_11 = arith.constant 0 : index
      %12 = vector.load %arg7[%c0_10, %c0_11] : memref<16x128xf32, #tpu.memory_space<vmem>>, vector<16x128xf32>
      %c0_12 = arith.constant 0 : index
      %c0_13 = arith.constant 0 : index
      %13 = vector.load %arg5[%c0_12, %c0_13] : memref<1x128xf32, #tpu.memory_space<vmem>>, vector<1x128xf32>
      %14 = vector.broadcast %13 : vector<1x128xf32> to vector<16x128xf32>
      %15 = arith.addf %12, %14 : vector<16x128xf32>
      %c0_14 = arith.constant 0 : index
      %c0_15 = arith.constant 0 : index
      %16 = vector.load %arg6[%c0_14, %c0_15] : memref<16x128xf32, #tpu.memory_space<vmem>>, vector<16x128xf32>
      tpu.vector_store %arg6[%c0_14, %c0_15], %15 {strides = array<i32>} : memref<16x128xf32, #tpu.memory_space<vmem>>, vector<16x128xf32>,
    } else {
    }
    return
  }
  func.func @transform_0(%arg0: i32, %arg1: i32, %arg2: i32) -> (i32, i32) {
    %c0_i32 = arith.constant 0 : i32
    return %arg0, %arg2 : i32, i32
  }
  func.func @transform_1(%arg0: i32, %arg1: i32, %arg2: i32) -> (i32, i32) {
    %c0_i32 = arith.constant 0 : i32
    return %arg2, %arg1 : i32, i32
  }
  func.func @transform_2(%arg0: i32, %arg1: i32, %arg2: i32) -> (i32, i32) {
    %c0_i32 = arith.constant 0 : i32
    %c0_i32_0 = arith.constant 0 : i32
    return %c0_i32, %arg1 : i32, i32
  }
  func.func @transform_3(%arg0: i32, %arg1: i32, %arg2: i32) -> (i32, i32) {
    %c0_i32 = arith.constant 0 : i32
    return %arg0, %arg1 : i32, i32
  }
}

</mosaic_0001>

<bundles_post_ra>
// kernel: tpu_custom_call.1
= control target key start
LH: loop header
LB: loop body
LE: loop exit
PB: predicated region body
PF: predicated region fallthrough
CT: control target
= control target key end

     0   :  { %8 = vsyncpa [#allocation4], 0  ;;  %s353_s0 = inlined_call_operand.hbm [shape: f32[16,128], index: 0, kind: input, shape index: {}]   ;;  %s354_s1 = inlined_call_operand.hbm [shape: f32[128,128], index: 1, kind: input, shape index: {}]   ;;  %s355_s2 = inlined_call_operand.vmem [shape: f32[1,128], index: 2, kind: input, shape index: {}]   ;;  %s356_s3 = inlined_call_operand.hbm [shape: f32[16,128], index: 3, kind: output, shape index: {}]  }
   0x1   :  { %9 = vsyncpa [#allocation7], 0 }
   0x2   :  { %10 = vsyncpa [#allocation5], 0  ;;  %s307_s12 = smov [#allocation3]  }
   0x3   :  { %s16_s13 = sshll.u32 %s307_s12, 4  ;;  %s17_s13 = int_to_ptr.vmem [resolvable:$true] %s16_s13 }
   0x4   :  { %s249_s14 = scalar_lea.vmem %s17_s13, 256  ;;  %p254_p1 = scmp.lt.s32.totalorder %s17_s13, %s17_s13 }
   0x5   :  { %p250_p0 = scmp.ne.s32.totalorder %s17_s13, %s249_s14  ;;  %p255_p2 = scmp.lt.s32.totalorder %s249_s14, %s249_s14 }
   0x7   :  { %p256_p3 = por %p255_p2, %p254_p1 }
   0x9   :  { %p257_p4 = pnand %p256_p3, %p250_p0 }
   0xb   :  { %260 = shalt.err (!%p257_p4)
}
   0xc   :  { %s308_s15 = smov 128   ;;  %s309_s16 = smov 8  }
   0xd   :  { %22 = dma.hbm_to_vmem [thread:$0]  %s353_s0, 256, %s17_s13, [#allocation4], %s308_s15, %s308_s15, %s309_s16  }
   0xe   :  { %s310_s19 = smov [#allocation6]  }
   0xf   :  { %s28_s20 = sshll.u32 %s310_s19, 4  ;;  %s29_s20 = int_to_ptr.vmem [resolvable:$true] %s28_s20 }
  0x10   :  { %s269_s21 = scalar_lea.vmem %s29_s20, 2048  ;;  %p274_p6 = scmp.lt.s32.totalorder %s29_s20, %s29_s20 }
  0x11   :  { %p270_p5 = scmp.ne.s32.totalorder %s29_s20, %s269_s21  ;;  %p275_p7 = scmp.lt.s32.totalorder %s269_s21, %s269_s21 }
  0x13   :  { %p276_p8 = por %p275_p7, %p274_p6 }
  0x15   :  { %p277_p9 = pnand %p276_p8, %p270_p5 }
  0x17   :  { %280 = shalt.err (!%p277_p9)
}
  0x18   :  { %34 = dma.hbm_to_vmem [thread:$0]  %s354_s1, 2048, %s29_s20, [#allocation7], %s308_s15, %s308_s15, %s309_s16  }
  0x19   :  { %301 = dma.done.wait [#allocation4], 256  }
  0x1a   :  { %302 = vsyncadd [#allocation4], 4294967040 }
  0x1b   :  { %303 = dma.done.wait [#allocation7], 2048  }
  0x1c   :  { %304 = vsyncadd [#allocation7], 4294965248  ;;  %v68_v0 = vld [vmem:[#allocation6 + $0x78] sm:$0xff]  ;;  %v67_v1 = vld [vmem:[#allocation6 + $0x70] sm:$0xff]  ;;  %s311_s24 = smov [#allocation8]  }
  0x1d   :  { %201 = vmatprep.subr.mxu0 %v68_v0  ;;  %v66_v2 = vld [vmem:[#allocation6 + $0x68] sm:$0xff]  ;;  %v65_v3 = vld [vmem:[#allocation6 + $0x60] sm:$0xff]  ;;  %v51_v4 = vld [vmem:[#allocation3] sm:$0xff]  ;;  %s169_s25 = sshll.u32 %s311_s24, 4  ;;  %s170_s25 = int_to_ptr.vmem [resolvable:$true] %s169_s25 }
  0x1e   :  { %202 = vmatpush3.msra.mxu0 %v68_v0  ;;  %v64_v5 = vld [vmem:[#allocation6 + $0x58] sm:$0xff]  ;;  %233 = vmatprep.mubr.f32.mxu0 %v51_v4  ;;  %v63_v6 = vld [vmem:[#allocation6 + $0x50] sm:$0xff]  ;;  %v62_v7 = vld [vmem:[#allocation6 + $0x48] sm:$0xff]  ;;  %s281_s26 = scalar_lea.vmem %s170_s25, 256  ;;  %p286_p11 = scmp.lt.s32.totalorder %s170_s25, %s170_s25 }
  0x1f   :  { %203 = vmatprep.subr.mxu0 %v67_v1  ;;  %v61_v8 = vld [vmem:[#allocation6 + $0x40] sm:$0xff]  ;;  %v60_v9 = vld [vmem:[#allocation6 + $0x38] sm:$0xff]  ;;  %v59_v10 = vld [vmem:[#allocation6 + $0x30] sm:$0xff]  ;;  %p282_p10 = scmp.ne.s32.totalorder %s170_s25, %s281_s26  ;;  %p287_p12 = scmp.lt.s32.totalorder %s281_s26, %s281_s26 }
  0x20   :  { %204 = vmatpush3.msra.mxu0 %v67_v1  ;;  %v58_v11 = vld [vmem:[#allocation6 + $0x28] sm:$0xff]  ;;  %v57_v12 = vld [vmem:[#allocation6 + $0x20] sm:$0xff]  ;;  %v56_v13 = vld [vmem:[#allocation6 + $0x18] sm:$0xff] }
  0x21   :  { %205 = vmatprep.subr.mxu0 %v66_v2  ;;  %v55_v14 = vld [vmem:[#allocation6 + $0x10] sm:$0xff]  ;;  %v54_v15 = vld [vmem:[#allocation6 + $0x8] sm:$0xff]  ;;  %v53_v16 = vld [vmem:[#allocation6] sm:$0xff]  ;;  %p288_p13 = por %p287_p12, %p286_p11 }
  0x22   :  { %206 = vmatpush3.msra.mxu0 %v66_v2  ;;  %v52_v17 = vld [vmem:[#allocation3 + $0x8] sm:$0xff]  ;;  %v182_v18 = vld [vmem:[%s355_s2] ss:$0 sm:$0xff] }
  0x23   :  { %207 = vmatprep.subr.mxu0 %v65_v3  ;;  %p289_p0 = pnand %p288_p13, %p282_p10 }
  0x24   :  { %208 = vmatpush3.msra.mxu0 %v65_v3 }
  0x25   :  { %209 = vmatprep.subr.mxu0 %v64_v5 }
  0x26   :  { %210 = vmatpush3.msra.mxu0 %v64_v5 }
  0x27   :  { %211 = vmatprep.subr.mxu0 %v63_v6 }
  0x28   :  { %212 = vmatpush3.msra.mxu0 %v63_v6 }
  0x29   :  { %213 = vmatprep.subr.mxu0 %v62_v7 }
  0x2a   :  { %214 = vmatpush3.msra.mxu0 %v62_v7 }
  0x2b   :  { %215 = vmatprep.subr.mxu0 %v61_v8 }
  0x2c   :  { %216 = vmatpush3.msra.mxu0 %v61_v8 }
  0x2d   :  { %217 = vmatprep.subr.mxu0 %v60_v9 }
  0x2e   :  { %218 = vmatpush3.msra.mxu0 %v60_v9 }
  0x2f   :  { %219 = vmatprep.subr.mxu0 %v59_v10 }
  0x30   :  { %220 = vmatpush3.msra.mxu0 %v59_v10 }
  0x31   :  { %221 = vmatprep.subr.mxu0 %v58_v11 }
  0x32   :  { %222 = vmatpush3.msra.mxu0 %v58_v11 }
  0x33   :  { %223 = vmatprep.subr.mxu0 %v57_v12 }
  0x34   :  { %224 = vmatpush3.msra.mxu0 %v57_v12 }
  0x35   :  { %225 = vmatprep.subr.mxu0 %v56_v13 }
  0x36   :  { %226 = vmatpush3.msra.mxu0 %v56_v13 }
  0x37   :  { %227 = vmatprep.subr.mxu0 %v55_v14 }
  0x38   :  { %228 = vmatpush3.msra.mxu0 %v55_v14 }
  0x39   :  { %229 = vmatprep.subr.mxu0 %v54_v15 }
  0x3a   :  { %230 = vmatpush3.msra.mxu0 %v54_v15 }
  0x3b   :  { %231 = vmatprep.subr.mxu0 %v53_v16 }
  0x3c   :  { %232 = vmatpush3.msra.mxu0 %v53_v16 }
  0x3d   :  { %234 = vmatmul.mubr.f32.vlgmr.msra.gmra.mxu0 %v52_v17 }
  0xfd   :  { %v235_v19 = vpop.f32.mrf.mxu0 }
  0xfe   :  { %v161_v20 = vadd.f32 %v235_v19, %v182_v18 }
  0xff   :  { %v135_v21 = vpop.f32.mrf.mxu0 }
 0x100   :  { %163 = vst [vmem:[#allocation8 + $0x8] sm:$0xff] %v161_v20  ;;  %v160_v22 = vadd.f32 %v182_v18, %v135_v21 }
 0x102   :  { %162 = vst [vmem:[#allocation8] sm:$0xff] %v160_v22 }
 0x103   :  { %292 = shalt.err (!%p289_p0)
}
 0x104   :  { %175 = dma.vmem_to_hbm [thread:$0]  %s170_s25, 256, %s356_s3, [#allocation5], %s308_s15, %s308_s15, %s309_s16  }
 0x105   :  { %305 = dma.done.wait [#allocation5], 256  }
 0x106   :  { %306 = vsyncadd [#allocation5], 4294967040 }
 0x107   :  { %179 = vsyncpa [#allocation4], 1 }
 0x108   :  { %180 = vsyncpa [#allocation7], 1 }
 0x109   :  { %181 = vsyncpa [#allocation5], 1 }

</bundles_post_ra>
